<compile_context>
chip_gen: v6e
topology: v6e:2x2x1
jax: 0.10.0
libtpu: 0.0.40
codegen_flags: <defaults>
</compile_context>

<pallas_src>
import jax
import jax.numpy as jnp
from jax.experimental import pallas as pl
from jax.experimental.pallas import tpu as pltpu


# ----------------------------- Pallas kernel --------------------------------
def _linear_gelu_kernel(x_ref, w_ref, b_ref, o_ref, acc_ref):
    """Tiled y = GELU(x @ W + b): MXU matmul with f32 accumulator, fused epilogue."""
    k = pl.program_id(2)

    @pl.when(k == 0)
    def _():
        acc_ref[...] = jnp.zeros_like(acc_ref)

    acc_ref[...] += jnp.dot(x_ref[...], w_ref[...],
                            preferred_element_type=jnp.float32)

    @pl.when(k == pl.num_programs(2) - 1)
    def _():
        y = acc_ref[...] + b_ref[...]                      # f32 (tm, tn)
        inv_sqrt2 = jnp.float32(0.7071067811865476)
        g = 0.5 * y * (1.0 + jax.lax.erf(y * inv_sqrt2))   # exact GELU (EUP erf)
        o_ref[...] = g.astype(o_ref.dtype)


def _round_up(a, m):
    return ((a + m - 1) // m) * m


def phi_linear_gelu(x2d, w, b):
    """y = GELU(x2d @ w + b).  x2d: (M, K) f32; w: (K, N) f32; b: (N,) f32."""
    M, K = x2d.shape
    _, N = w.shape

    # Tile sizes: lane-dense (multiples of 128 on feature dims, 8 on rows).
    tm = min(256, _round_up(M, 8))
    tn = min(512, _round_up(N, 128))
    tk = min(512, _round_up(K, 128))
    Mp = _round_up(M, tm)
    Np = _round_up(N, tn)
    Kp = _round_up(K, tk)

    # Zero padding is exact: extra K terms contribute 0, padded rows/cols are
    # sliced off below.  bf16 MXU inputs; f32 accumulation + epilogue.
    xp = x2d if (Mp == M and Kp == K) else jnp.pad(x2d, ((0, Mp - M), (0, Kp - K)))
    wp = w if (Kp == K and Np == N) else jnp.pad(w, ((0, Kp - K), (0, Np - N)))
    xp = xp.astype(jnp.bfloat16)
    wp = wp.astype(jnp.bfloat16)
    bp = jnp.pad(b, ((0, Np - N),)).astype(jnp.float32).reshape(1, Np)

    grid = (Mp // tm, Np // tn, Kp // tk)

    cost = pl.CostEstimate(
        flops=2 * Mp * Kp * Np,
        transcendentals=Mp * Np,
        bytes_accessed=Mp * Kp * 2 + Kp * Np * 2 + Np * 4 + Mp * Np * 4,
    )

    out_p = pl.pallas_call(
        _linear_gelu_kernel,
        out_shape=jax.ShapeDtypeStruct((Mp, Np), jnp.float32),
        grid_spec=pltpu.PrefetchScalarGridSpec(
            num_scalar_prefetch=0,
            grid=grid,
            in_specs=[
                pl.BlockSpec((tm, tk), lambda i, j, k: (i, k)),   # x tile
                pl.BlockSpec((tk, tn), lambda i, j, k: (k, j)),   # W tile
                pl.BlockSpec((1, tn), lambda i, j, k: (0, j)),    # bias tile
            ],
            out_specs=pl.BlockSpec((tm, tn), lambda i, j, k: (i, j)),
            scratch_shapes=[pltpu.VMEM((tm, tn), jnp.float32)],
        ),
        compiler_params=pltpu.CompilerParams(
            dimension_semantics=("parallel", "parallel", "arbitrary"),
            vmem_limit_bytes=32 * 1024 * 1024,
        ),
        cost_estimate=cost,
    )(xp, wp, bp)

    if Mp == M and Np == N:
        return out_p
    return out_p[:M, :N]


# ------------------------------ Phi module -----------------------------------
def adjust_tensor(x_o, target_seq_len, key):
    """Reference adjust: repeat along seq, truncate, shuffle (deterministic perm)."""
    batch, orig_seq_len, features = x_o.shape
    repeat_times = (target_seq_len + orig_seq_len - 1) // orig_seq_len
    x_rep = jnp.tile(x_o, (1, repeat_times, 1))
    x_adj = x_rep[:, :target_seq_len, :]
    shuffled = jax.random.permutation(key, target_seq_len)
    return x_adj[:, shuffled, :]


def init_phi_params(key, in_dim, out_dim):
    """Deterministic init mimicking nn.Linear's uniform(-1/sqrt(in), 1/sqrt(in))."""
    kw, kb = jax.random.split(key)
    bound = 1.0 / jnp.sqrt(jnp.float32(in_dim))
    w = jax.random.uniform(kw, (in_dim, out_dim), jnp.float32, -bound, bound)
    b = jax.random.uniform(kb, (out_dim,), jnp.float32, -bound, bound)
    return w, b


def phi_forward(x, target_seq_len, params, perm_key):
    """Phi forward: adjust_tensor -> Linear -> GELU -> Dropout(eval=identity).

    adjust_tensor(x)[b, t] == x[b, perm[t] % orig_seq]; since Linear+GELU are
    row-wise, gather commutes with them: run the kernel on the B*orig_seq
    unique rows, then apply the repeat+shuffle gather to the OUTPUT (saves the
    HBM round trip for the adjusted input and the FLOPs on repeated rows).
    """
    w, b = params
    B, S, K = x.shape
    N = w.shape[1]

    perm = jax.random.permutation(perm_key, target_seq_len)
    src = perm % S                                       # source rows in x

    y = phi_linear_gelu(x.reshape(B * S, K), w, b)       # Pallas hot path
    y = y.reshape(B, S, N)
    y_adj = jnp.take(y, src, axis=1)                     # repeat+shuffle gather
    # TODO(synk): training-mode Dropout(p=0.25) not applied (eval-mode identity);
    # would need pltpu.prng_seed/prng_random_bits masking in the kernel.
    return y_adj


# --------------------------------- main --------------------------------------
if __name__ == "__main__":
    key = jax.random.PRNGKey(0)
    k_x, k_param, k_perm = jax.random.split(key, 3)

    batch, orig_seq, in_dim, out_dim = 2, 4, 32, 32
    target_seq_len = 8

    x = jax.random.normal(k_x, (batch, orig_seq, in_dim), jnp.float32)
    params = init_phi_params(k_param, in_dim, out_dim)

    out = jax.block_until_ready(phi_forward(x, target_seq_len, params, k_perm))
    assert out.shape == (batch, target_seq_len, out_dim)

    # Reference: adjust-then-(Linear+GELU), matching the kernel's bf16 MXU inputs.
    w, b = params
    x_adj = adjust_tensor(x, target_seq_len, k_perm)
    y_bf16 = jnp.dot(x_adj.astype(jnp.bfloat16), w.astype(jnp.bfloat16),
                     preferred_element_type=jnp.float32) + b
    ref = 0.5 * y_bf16 * (1.0 + jax.lax.erf(y_bf16 * 0.7071067811865476))
    assert jnp.allclose(out, ref, atol=1e-4, rtol=1e-4)

    # Loose semantic check against the pure-f32 reference (bf16 input error bound).
    y_f32 = x_adj @ w + b
    ref_f32 = 0.5 * y_f32 * (1.0 + jax.lax.erf(y_f32 * 0.7071067811865476))
    assert jnp.allclose(out, ref_f32, atol=5e-2, rtol=5e-2)

    print("KERNEL_OK")
</pallas_src>

<mosaic_0001>
module attributes {stable_mosaic.version = 11 : i64} {
  func.func @_linear_gelu_kernel(%arg0: i32, %arg1: i32, %arg2: i32, %arg3: memref<8x128xbf16, #tpu.memory_space<vmem>>, %arg4: memref<128x128xbf16, #tpu.memory_space<vmem>>, %arg5: memref<1x128xf32, #tpu.memory_space<vmem>>, %arg6: memref<8x128xf32, #tpu.memory_space<vmem>>, %arg7: memref<8x128xf32, #tpu.memory_space<vmem>>) attributes {dimension_semantics = [#tpu.dimension_semantics<parallel>, #tpu.dimension_semantics<parallel>, #tpu.dimension_semantics<arbitrary>], iteration_bounds = array<i64: 1, 1, 1>, scalar_prefetch = 0 : i64, scratch_operands = 1 : i64, tpu.core_type = #tpu.core_type<tc>, window_params = [{transform_indices = @transform_0, window_bounds = array<i64: 8, 128>}, {transform_indices = @transform_1, window_bounds = array<i64: 128, 128>}, {transform_indices = @transform_2, window_bounds = array<i64: 1, 128>}, {transform_indices = @transform_3, window_bounds = array<i64: 8, 128>}]} {
    %c0_i32 = arith.constant 0 : i32
    %0 = arith.cmpi eq, %arg2, %c0_i32 : i32
    %1 = arith.extui %0 : i1 to i32
    %c0_i32_0 = arith.constant 0 : i32
    %2 = arith.cmpi ne, %1, %c0_i32_0 : i32
    scf.if %2 {
      %cst_10 = arith.constant 0.000000e+00 : f32
      %12 = vector.broadcast %cst_10 : f32 to vector<8x128xf32>
      %c0_11 = arith.constant 0 : index
      %c0_12 = arith.constant 0 : index
      %13 = vector.load %arg7[%c0_11, %c0_12] : memref<8x128xf32, #tpu.memory_space<vmem>>, vector<8x128xf32>
      tpu.vector_store %arg7[%c0_11, %c0_12], %12 {strides = array<i32>} : memref<8x128xf32, #tpu.memory_space<vmem>>, vector<8x128xf32>,
    } else {
    }
    %c0 = arith.constant 0 : index
    %c0_1 = arith.constant 0 : index
    %3 = vector.load %arg7[%c0, %c0_1] : memref<8x128xf32, #tpu.memory_space<vmem>>, vector<8x128xf32>
    %c0_2 = arith.constant 0 : index
    %c0_3 = arith.constant 0 : index
    %4 = vector.load %arg3[%c0_2, %c0_3] : memref<8x128xbf16, #tpu.memory_space<vmem>>, vector<8x128xbf16>
    %c0_4 = arith.constant 0 : index
    %c0_5 = arith.constant 0 : index
    %5 = vector.load %arg4[%c0_4, %c0_5] : memref<128x128xbf16, #tpu.memory_space<vmem>>, vector<128x128xbf16>
    %cst = arith.constant dense<0.000000e+00> : vector<8x128xf32>
    %6 = tpu.matmul %4, %5, %cst {dimension_numbers = #tpu.dot_dimension_numbers<[1], [0], [0], [1], [0, 0, 1, 1], [], []>} : vector<8x128xbf16>, vector<128x128xbf16>, vector<8x128xf32> -> vector<8x128xf32>
    %7 = arith.addf %3, %6 : vector<8x128xf32>
    %c0_6 = arith.constant 0 : index
    %c0_7 = arith.constant 0 : index
    %8 = vector.load %arg7[%c0_6, %c0_7] : memref<8x128xf32, #tpu.memory_space<vmem>>, vector<8x128xf32>
    tpu.vector_store %arg7[%c0_6, %c0_7], %7 {strides = array<i32>} : memref<8x128xf32, #tpu.memory_space<vmem>>, vector<8x128xf32>,
    %c0_i32_8 = arith.constant 0 : i32
    %9 = arith.cmpi eq, %arg2, %c0_i32_8 : i32
    %10 = arith.extui %9 : i1 to i32
    %c0_i32_9 = arith.constant 0 : i32
    %11 = arith.cmpi ne, %10, %c0_i32_9 : i32
    scf.if %11 {
      %c0_10 = arith.constant 0 : index
      %c0_11 = arith.constant 0 : index
      %12 = vector.load %arg7[%c0_10, %c0_11] : memref<8x128xf32, #tpu.memory_space<vmem>>, vector<8x128xf32>
      %c0_12 = arith.constant 0 : index
      %c0_13 = arith.constant 0 : index
      %13 = vector.load %arg5[%c0_12, %c0_13] : memref<1x128xf32, #tpu.memory_space<vmem>>, vector<1x128xf32>
      %14 = vector.broadcast %13 : vector<1x128xf32> to vector<8x128xf32>
      %15 = arith.addf %12, %14 : vector<8x128xf32>
      %cst_14 = arith.constant 5.000000e-01 : f32
      %16 = vector.broadcast %cst_14 : f32 to vector<8x128xf32>
      %17 = arith.mulf %16, %15 : vector<8x128xf32>
      %cst_15 = arith.constant 0.707106769 : f32
      %18 = vector.broadcast %cst_15 : f32 to vector<8x128xf32>
      %19 = arith.mulf %15, %18 : vector<8x128xf32>
      %20 = math.erf %19 : vector<8x128xf32>
      %cst_16 = arith.constant 1.000000e+00 : f32
      %21 = vector.broadcast %cst_16 : f32 to vector<8x128xf32>
      %22 = arith.addf %21, %20 : vector<8x128xf32>
      %23 = arith.mulf %17, %22 : vector<8x128xf32>
      %c0_17 = arith.constant 0 : index
      %c0_18 = arith.constant 0 : index
      %24 = vector.load %arg6[%c0_17, %c0_18] : memref<8x128xf32, #tpu.memory_space<vmem>>, vector<8x128xf32>
      tpu.vector_store %arg6[%c0_17, %c0_18], %23 {strides = array<i32>} : memref<8x128xf32, #tpu.memory_space<vmem>>, vector<8x128xf32>,
    } else {
    }
    return
  }
  func.func @transform_0(%arg0: i32, %arg1: i32, %arg2: i32) -> (i32, i32) {
    %c0_i32 = arith.constant 0 : i32
    return %arg0, %arg2 : i32, i32
  }
  func.func @transform_1(%arg0: i32, %arg1: i32, %arg2: i32) -> (i32, i32) {
    %c0_i32 = arith.constant 0 : i32
    return %arg2, %arg1 : i32, i32
  }
  func.func @transform_2(%arg0: i32, %arg1: i32, %arg2: i32) -> (i32, i32) {
    %c0_i32 = arith.constant 0 : i32
    %c0_i32_0 = arith.constant 0 : i32
    return %c0_i32, %arg1 : i32, i32
  }
  func.func @transform_3(%arg0: i32, %arg1: i32, %arg2: i32) -> (i32, i32) {
    %c0_i32 = arith.constant 0 : i32
    return %arg0, %arg1 : i32, i32
  }
}

</mosaic_0001>

<bundles_post_ra>
// kernel: tpu_custom_call.1
= control target key start
LH: loop header
LB: loop body
LE: loop exit
PB: predicated region body
PF: predicated region fallthrough
CT: control target
= control target key end

     0   :  { %8 = vsyncpa [#allocation4], 0  ;;  %s349_s0 = inlined_call_operand.hbm [shape: bf16[8,128], index: 0, kind: input, shape index: {}]   ;;  %s350_s1 = inlined_call_operand.hbm [shape: bf16[128,128], index: 1, kind: input, shape index: {}]   ;;  %s351_s2 = inlined_call_operand.vmem [shape: f32[1,128], index: 2, kind: input, shape index: {}]   ;;  %s352_s3 = inlined_call_operand.hbm [shape: f32[8,128], index: 3, kind: output, shape index: {}]  }
   0x1   :  { %9 = vsyncpa [#allocation7], 0 }
   0x2   :  { %10 = vsyncpa [#allocation5], 0  ;;  %s310_s12 = smov [#allocation3]   ;;  %s311_s14 = smov [#allocation6]  }
   0x3   :  { %s17_s13 = sshll.u32 %s310_s12, 4  ;;  %s26_s15 = sshll.u32 %s311_s14, 4  ;;  %s18_s13 = int_to_ptr.vmem [resolvable:$true] %s17_s13  ;;  %s27_s15 = int_to_ptr.vmem [resolvable:$true] %s26_s15 }
   0x4   :  { %s252_s16 = scalar_lea.vmem %s18_s13, 64  ;;  %p257_p1 = scmp.lt.s32.totalorder %s18_s13, %s18_s13 }
   0x5   :  { %p253_p0 = scmp.ne.s32.totalorder %s18_s13, %s252_s16  ;;  %p258_p2 = scmp.lt.s32.totalorder %s252_s16, %s252_s16 }
   0x7   :  { %p259_p3 = por %p258_p2, %p257_p1 }
   0x9   :  { %p260_p4 = pnand %p259_p3, %p253_p0 }
   0xb   :  { %263 = shalt.err (!%p260_p4)
}
   0xc   :  { %20 = dma.hbm_to_vmem [thread:$0]  %s349_s0, 64, %s18_s13, [#allocation4]  }
   0xd   :  { %s272_s19 = scalar_lea.vmem %s27_s15, 1024  ;;  %p277_p6 = scmp.lt.s32.totalorder %s27_s15, %s27_s15 }
   0xe   :  { %p273_p5 = scmp.ne.s32.totalorder %s27_s15, %s272_s19  ;;  %p278_p7 = scmp.lt.s32.totalorder %s272_s19, %s272_s19 }
  0x10   :  { %p279_p8 = por %p278_p7, %p277_p6 }
  0x12   :  { %p280_p9 = pnand %p279_p8, %p273_p5 }
  0x14   :  { %283 = shalt.err (!%p280_p9)
}
  0x15   :  { %s312_s20 = smov 64   ;;  %s313_s21 = smov 4  }
  0x16   :  { %32 = dma.hbm_to_vmem [thread:$0]  %s350_s1, 1024, %s27_s15, [#allocation7], %s312_s20, %s312_s20, %s313_s21  }
  0x17   :  { %304 = dma.done.wait [#allocation4], 64  }
  0x18   :  { %305 = vsyncadd [#allocation4], 4294967232 }
  0x19   :  { %306 = dma.done.wait [#allocation7], 1024  }
  0x1a   :  { %307 = vsyncadd [#allocation7], 4294966272  ;;  %v314_v0 = vmov 0.0   ;;  %vm315_vm0 = vmmov 0   ;;  %v234_v1 = vld [vmem:[#allocation6 + $0x38] sm:$0xff]   ;;  %v235_v2 = vld [vmem:[#allocation6 + $0x30] sm:$0xff]  }
  0x1b   :  { %207 = vmatprep.subr.bf16.mxu0 %v314_v0  ;;  %223 = vmatprep.mubr.msk.bf16.mxu0 %vm315_vm0, %v314_v0  ;;  %v236_v3 = vld [vmem:[#allocation6 + $0x28] sm:$0xff]   ;;  %v237_v4 = vld [vmem:[#allocation6 + $0x20] sm:$0xff]   ;;  %v238_v5 = vld [vmem:[#allocation6 + $0x18] sm:$0xff]   ;;  %s316_s24 = smov [#allocation8]  }
  0x1c   :  { %208 = vmatpush3.bf16.msra.mxu0 %v234_v1  ;;  %v239_v6 = vld [vmem:[#allocation6 + $0x10] sm:$0xff]   ;;  %v240_v7 = vld [vmem:[#allocation6 + $0x8] sm:$0xff]   ;;  %v241_v8 = vld [vmem:[#allocation6] sm:$0xff]   ;;  %s179_s25 = sshll.u32 %s316_s24, 4  ;;  %s180_s25 = int_to_ptr.vmem [resolvable:$true] %s179_s25 }
  0x1d   :  { %209 = vmatprep.subr.bf16.mxu0 %v314_v0  ;;  %v48_v9 = vld [vmem:[#allocation3] sm:$0xf]  ;;  %s284_s26 = scalar_lea.vmem %s180_s25, 128  ;;  %p289_p11 = scmp.lt.s32.totalorder %s180_s25, %s180_s25 }
  0x1e   :  { %v197_v10 = vld [vmem:[%s351_s2] ss:$0 sm:$0xff]  ;;  %p285_p10 = scmp.ne.s32.totalorder %s180_s25, %s284_s26  ;;  %p290_p12 = scmp.lt.s32.totalorder %s284_s26, %s284_s26 }
  0x20   :  { %210 = vmatpush3.bf16.msra.mxu0 %v235_v2  ;;  %p291_p13 = por %p290_p12, %p289_p11 }
  0x21   :  { %211 = vmatprep.subr.bf16.mxu0 %v314_v0 }
  0x22   :  { %p292_p0 = pnand %p291_p13, %p285_p10 }
  0x24   :  { %212 = vmatpush3.bf16.msra.mxu0 %v236_v3 }
  0x25   :  { %213 = vmatprep.subr.bf16.mxu0 %v314_v0 }
  0x28   :  { %214 = vmatpush3.bf16.msra.mxu0 %v237_v4 }
  0x29   :  { %215 = vmatprep.subr.bf16.mxu0 %v314_v0 }
  0x2c   :  { %216 = vmatpush3.bf16.msra.mxu0 %v238_v5 }
  0x2d   :  { %217 = vmatprep.subr.bf16.mxu0 %v314_v0 }
  0x30   :  { %218 = vmatpush3.bf16.msra.mxu0 %v239_v6 }
  0x31   :  { %219 = vmatprep.subr.bf16.mxu0 %v314_v0 }
  0x34   :  { %220 = vmatpush3.bf16.msra.mxu0 %v240_v7 }
  0x35   :  { %221 = vmatprep.subr.bf16.mxu0 %v314_v0 }
  0x38   :  { %222 = vmatpush3.bf16.msra.mxu0 %v241_v8 }
  0x3b   :  { %224 = vmatmul.mubr.bf16.vlgmr.msra.gmra.mxu0 %v48_v9 }
  0xfb   :  { %v147_v11 = vpop.f32.mrf.mxu0 }
  0xfc   :  { %v166_v12 = vadd.f32 %v197_v10, %v147_v11 }
  0xfd   :  { %v225_v13 = vpop.f32.mrf.mxu0 }
  0xfe   :  { %v168_v14 = vmul.f32 0.70710677, %v166_v12  ;;  %v167_v18 = vmul.f32 0.5, %v166_v12 }
  0xff   :  { %v150_v15 = vpop.f32.mrf.mxu0 }
 0x100   :  { %242 = verf.f32 %v168_v14 }
 0x101   :  { %v226_v16 = vpop.f32.mrf.mxu0 }
 0x10d   :  { %v243_v17 = vpop.eup %242 }
 0x10e   :  { %v170_v19 = vadd.f32 1.0, %v243_v17 }
 0x110   :  { %v171_v20 = vmul.f32 %v170_v19, %v167_v18 }
 0x112   :  { %172 = vst [vmem:[#allocation8] sm:$0xff] %v171_v20 }
 0x113   :  { %295 = shalt.err (!%p292_p0)
}
 0x114   :  { %182 = dma.vmem_to_hbm [thread:$0]  %s180_s25, 128, %s352_s3, [#allocation5]  }
 0x115   :  { %308 = dma.done.wait [#allocation5], 128  }
 0x116   :  { %309 = vsyncadd [#allocation5], 4294967168 }
 0x117   :  { %186 = vsyncpa [#allocation4], 1 }
 0x118   :  { %187 = vsyncpa [#allocation7], 1 }
 0x119   :  { %188 = vsyncpa [#allocation5], 1 }

</bundles_post_ra>
